<compile_context>
chip_gen: v7x
topology: tpu7x:2x2x1
jax: 0.10.0
libtpu: 0.0.40
codegen_flags: <defaults>
</compile_context>

<pallas_src>
import functools

import numpy as np
import jax
import jax.numpy as jnp
from jax.experimental import pallas as pl
from jax.experimental.pallas import tpu as pltpu


_VMEM_LIMIT_BYTES = 48 * 1024 * 1024   # > v5e/v6e scoped defaults, < v7x 64 MiB physical
_TARGET_BLOCK_BYTES = 4 * 1024 * 1024  # ~4 MiB per x block amortizes ~0.35 us/step overhead
_MIN_GRID_STEPS = 4                    # keep multiple grid steps for v7x megacore sharding


def _dct_ortho_matrix_np(n: int) -> np.ndarray:
    """Equivalent to scipy.fft.dct(np.eye(n), norm='ortho'), real float64."""
    i = np.arange(n, dtype=np.float64)[:, None]   # sample index (rows)
    k = np.arange(n, dtype=np.float64)[None, :]   # frequency index (cols)
    m = np.cos(np.pi * (2.0 * i + 1.0) * k / (2.0 * n))
    scale = np.where(k == 0, np.sqrt(1.0 / n), np.sqrt(2.0 / n))
    return m * scale


def _kron_max_hw(dtype) -> int:
    # Kron path FLOPs inflate by ~HW/(H+W) vs the separable transform: free while
    # HBM-bound, so allow more pixels for bf16; flip earlier for f32 (extra MXU passes).
    return 1024 if jnp.dtype(dtype).itemsize <= 2 else 512


def _sublane(itemsize: int) -> int:
    # Native sublane packing: 8 rows/vreg for f32, 16 for bf16, 32 for int8/fp8.
    return max(8, 32 // max(int(itemsize), 1))


def _choose_tile_n(n_rows: int, row_bytes: int, itemsize: int, override=None) -> int:
    """Pick the N-tile: ~4 MiB per block, dtype-sublane aligned, grid kept >= a few steps."""
    sub = _sublane(itemsize)
    if override is not None:
        tn = max(sub, (int(override) // sub) * sub)
    else:
        tn = max(sub, int(_TARGET_BLOCK_BYTES) // max(int(row_bytes), 1))
        # Cap so the "parallel" grid axis has several steps (v7x: 2 TensorCores).
        cap = max(sub, -(-int(n_rows) // _MIN_GRID_STEPS))
        tn = min(tn, cap)
        tn = max(sub, (tn // sub) * sub)
    if tn >= n_rows:
        return int(n_rows)   # full-extent block is always layout-legal
    return int(tn)


def _dct2_kron_kernel(x_ref, k_ref, o_ref):
    # x_ref: (tn, HW) lane-dense; k_ref: (HW, HW) resident; o_ref: (tn, HW).
    # Precision: Mosaic's default f32 matmul path is accurate (validated to 1e-4);
    # bf16 inputs use bf16 operands with f32 accumulation.
    out = jnp.dot(x_ref[...], k_ref[...], preferred_element_type=jnp.float32)
    o_ref[...] = out.astype(o_ref.dtype)


def _dct2_twopass_kernel(x_ref, mw_ref, mh_ref, o_ref):
    # Separable fallback for large H*W.  One in-kernel transpose (was two):
    # the output block is emitted in (n, j, i) order; the wrapper swaps back.
    tn, H, W = x_ref.shape
    # W pass: minor-dim contraction, no relayout needed.
    t = jnp.dot(x_ref[...].reshape(tn * H, W), mw_ref[...],
                preferred_element_type=jnp.float32).reshape(tn, H, W)    # (n, h, j)
    t = jnp.swapaxes(t, 1, 2)                                            # (n, j, h) - single XLU transpose
    # H pass: again a minor-dim contraction; lands directly in (n, j, i).
    o = jnp.dot(t.reshape(tn * W, H), mh_ref[...],
                preferred_element_type=jnp.float32).reshape(tn, W, H)
    o_ref[...] = o.astype(o_ref.dtype)


def _kron_pallas_call(x2, k, tn):
    rows, width = x2.shape
    grid = (pl.cdiv(rows, tn),)
    return pl.pallas_call(
        _dct2_kron_kernel,
        out_shape=jax.ShapeDtypeStruct((rows, width), x2.dtype),
        grid_spec=pltpu.PrefetchScalarGridSpec(
            num_scalar_prefetch=0,
            grid=grid,
            in_specs=[
                pl.BlockSpec((tn, width), lambda n: (n, 0)),       # x slab (lane-dense)
                pl.BlockSpec((width, width), lambda n: (0, 0)),    # kron matrix (resident)
            ],
            out_specs=pl.BlockSpec((tn, width), lambda n: (n, 0)),
        ),
        compiler_params=pltpu.CompilerParams(
            dimension_semantics=("parallel",),
            vmem_limit_bytes=_VMEM_LIMIT_BYTES),
    )(x2, k)


@functools.partial(jax.jit, static_argnames=("tile_n",))
def dct2(x: jnp.ndarray, tile_n=None) -> jnp.ndarray:
    """2-D orthonormal DCT-II over the last two axes of x (any leading dims)."""
    *lead, H, W = x.shape
    N = 1
    for d in lead:
        N *= int(d)
    HW = H * W
    itemsize = jnp.dtype(x.dtype).itemsize

    mh64 = _dct_ortho_matrix_np(H)
    mw64 = _dct_ortho_matrix_np(W)

    if HW <= _kron_max_hw(x.dtype):
        # --- single lane-dense matmul against kron(mh, mw) -----------------
        k_np = np.kron(mh64, mw64).astype(np.float32)           # (HW, HW)

        # Lane-density guard for tiny spatial sizes: pack g images per row so
        # the output row is a full 128-lane vreg (unmasked stores).
        g = 1
        if HW < 128 and 128 % HW == 0:
            g = 128 // HW
            k_np = np.kron(np.eye(g, dtype=np.float32), k_np)   # block-diagonal

        k = jnp.asarray(k_np)
        if x.dtype == jnp.bfloat16:
            k = k.astype(jnp.bfloat16)   # MXU-native inputs; f32 accumulation in-kernel

        x2 = x.reshape(N, HW)
        Np = N
        if g > 1:
            Np = -(-N // g) * g
            if Np != N:   # tiny (< g rows) zero pad so rows pack evenly
                x2 = jnp.concatenate(
                    [x2, jnp.zeros((Np - N, HW), dtype=x2.dtype)], axis=0)
            x2 = x2.reshape(Np // g, g * HW)

        rows, width = x2.shape
        tn = _choose_tile_n(rows, width * itemsize, itemsize, tile_n)
        out2 = _kron_pallas_call(x2, k, tn)

        if g > 1:
            out2 = out2.reshape(Np, HW)[:N]
        return out2.reshape(x.shape)

    # --- large spatial dims: separable two-pass path ------------------------
    mh = jnp.asarray(mh64.astype(np.float32))
    mw = jnp.asarray(mw64.astype(np.float32))
    if x.dtype == jnp.bfloat16:
        mh = mh.astype(jnp.bfloat16)
        mw = mw.astype(jnp.bfloat16)
    x3 = x.reshape(N, H, W)

    # Budget the tile against the kernel's f32 temporaries (~3 block copies) as
    # well as the in/out blocks themselves (matters on v7x's 64 MiB VMEM).
    eff_row_bytes = HW * itemsize + 3 * HW * 4
    tn = _choose_tile_n(N, eff_row_bytes, itemsize, tile_n)
    grid = (pl.cdiv(N, tn),)

    out3 = pl.pallas_call(
        _dct2_twopass_kernel,
        out_shape=jax.ShapeDtypeStruct((N, W, H), x.dtype),     # (n, j, i) blocks
        grid_spec=pltpu.PrefetchScalarGridSpec(
            num_scalar_prefetch=0,
            grid=grid,
            in_specs=[
                pl.BlockSpec((tn, H, W), lambda n: (n, 0, 0)),
                pl.BlockSpec((W, W), lambda n: (0, 0)),
                pl.BlockSpec((H, H), lambda n: (0, 0)),
            ],
            out_specs=pl.BlockSpec((tn, W, H), lambda n: (n, 0, 0)),
        ),
        compiler_params=pltpu.CompilerParams(
            dimension_semantics=("parallel",),
            vmem_limit_bytes=_VMEM_LIMIT_BYTES),
    )(x3, mw, mh)
    return jnp.swapaxes(out3, -1, -2).reshape(x.shape)   # back to (..., i, j)


def _reference_dct2(x):
    H, W = x.shape[-2:]
    mh = jnp.asarray(_dct_ortho_matrix_np(H).astype(np.float32))
    mw = jnp.asarray(_dct_ortho_matrix_np(W).astype(np.float32))
    out = jnp.einsum('...hw,hi,wj->...ij', x.astype(jnp.float32), mh, mw)
    return out.astype(x.dtype)


if __name__ == "__main__":
    key = jax.random.PRNGKey(0)

    # Main case: matches the module's typical use (16x16 DCT over (B, C) images).
    B, C, H, W = 2, 4, 16, 16
    x = jax.random.normal(key, (B, C, H, W), dtype=jnp.float32)
    out = jax.block_until_ready(dct2(x))
    ref = _reference_dct2(x)
    assert out.shape == x.shape, (out.shape, x.shape)
    assert out.dtype == x.dtype, (out.dtype, x.dtype)
    err = float(jnp.max(jnp.abs(out - ref)))
    assert err < 1e-4, f"max abs error too large: {err}"

    # Ragged final block (N not a multiple of the tile; Pallas masks the partial
    # last block; rows are independent so discarded OOB rows cannot pollute output).
    x2 = jax.random.normal(jax.random.PRNGKey(0), (5, 13, 16, 16), dtype=jnp.float32)
    out2 = jax.block_until_ready(dct2(x2, tile_n=8))
    err2 = float(jnp.max(jnp.abs(out2 - _reference_dct2(x2))))
    assert err2 < 1e-4, f"ragged-tile max abs error too large: {err2}"

    # Small-HW guard: 8x8 patches (HW=64 < 128) exercise the lane-packing path
    # (g=2 images per 128-lane row, block-diagonal K, odd N triggers the pad).
    x3 = jax.random.normal(jax.random.PRNGKey(0), (3, 5, 8, 8), dtype=jnp.float32)
    out3 = jax.block_until_ready(dct2(x3))
    err3 = float(jnp.max(jnp.abs(out3 - _reference_dct2(x3))))
    assert err3 < 1e-4, f"packed small-HW max abs error too large: {err3}"

    # bf16 path: K cast to bf16, f32 accumulation, 16-row sublane alignment.
    xb = jax.random.normal(jax.random.PRNGKey(0), (2, 4, 16, 16), dtype=jnp.bfloat16)
    outb = jax.block_until_ready(dct2(xb))
    refb = _reference_dct2(xb.astype(jnp.float32))
    errb = float(jnp.max(jnp.abs(outb.astype(jnp.float32) - refb)))
    assert errb < 1e-1, f"bf16 max abs error too large: {errb}"

    print("KERNEL_OK")
</pallas_src>

<mosaic_0001>
module attributes {stable_mosaic.version = 11 : i64} {
  func.func @_dct2_kron_kernel(%arg0: i32, %arg1: memref<8x256xf32, #tpu.memory_space<vmem>>, %arg2: memref<256x256xf32, #tpu.memory_space<vmem>>, %arg3: memref<8x256xf32, #tpu.memory_space<vmem>>) attributes {dimension_semantics = [#tpu.dimension_semantics<parallel>], iteration_bounds = array<i64: 1>, scalar_prefetch = 0 : i64, scratch_operands = 0 : i64, tpu.core_type = #tpu.core_type<tc>, window_params = [{transform_indices = @transform_0, window_bounds = array<i64: 8, 256>}, {pipeline_mode = #tpu.pipeline_mode<synchronous>, transform_indices = @transform_1, window_bounds = array<i64: 256, 256>}, {transform_indices = @transform_2, window_bounds = array<i64: 8, 256>}]} {
    %c0 = arith.constant 0 : index
    %c0_0 = arith.constant 0 : index
    %0 = vector.load %arg1[%c0, %c0_0] : memref<8x256xf32, #tpu.memory_space<vmem>>, vector<8x256xf32>
    %c0_1 = arith.constant 0 : index
    %c0_2 = arith.constant 0 : index
    %1 = vector.load %arg2[%c0_1, %c0_2] : memref<256x256xf32, #tpu.memory_space<vmem>>, vector<256x256xf32>
    %cst = arith.constant dense<0.000000e+00> : vector<8x256xf32>
    %2 = tpu.matmul %0, %1, %cst {dimension_numbers = #tpu.dot_dimension_numbers<[1], [0], [0], [1], [0, 0, 1, 1], [], []>} : vector<8x256xf32>, vector<256x256xf32>, vector<8x256xf32> -> vector<8x256xf32>
    %c0_3 = arith.constant 0 : index
    %c0_4 = arith.constant 0 : index
    %3 = vector.load %arg3[%c0_3, %c0_4] : memref<8x256xf32, #tpu.memory_space<vmem>>, vector<8x256xf32>
    tpu.vector_store %arg3[%c0_3, %c0_4], %2 {strides = array<i32>} : memref<8x256xf32, #tpu.memory_space<vmem>>, vector<8x256xf32>,
    return
  }
  func.func @transform_0(%arg0: i32) -> (i32, i32) {
    %c0_i32 = arith.constant 0 : i32
    %c0_i32_0 = arith.constant 0 : i32
    return %arg0, %c0_i32 : i32, i32
  }
  func.func @transform_1(%arg0: i32) -> (i32, i32) {
    %c0_i32 = arith.constant 0 : i32
    %c0_i32_0 = arith.constant 0 : i32
    %c0_i32_1 = arith.constant 0 : i32
    return %c0_i32, %c0_i32_0 : i32, i32
  }
  func.func @transform_2(%arg0: i32) -> (i32, i32) {
    %c0_i32 = arith.constant 0 : i32
    %c0_i32_0 = arith.constant 0 : i32
    return %arg0, %c0_i32 : i32, i32
  }
}

</mosaic_0001>

<bundles_post_ra>
// kernel: dct2.1
= control target key start
LH: loop header
LB: loop body
LE: loop exit
PB: predicated region body
PF: predicated region fallthrough
CT: control target
= control target key end

     0   :  { %7 = vsyncpa [#allocation3], 0  ;;  %s260_s9 = smov [#allocation2]   ;;  %s302_s0 = inlined_call_operand.vmem [shape: f32[8,256], index: 0, kind: input, shape index: {}]   ;;  %s303_s1 = inlined_call_operand.hbm [shape: f32[256,256], index: 1, kind: input, shape index: {}]   ;;  %s304_s2 = inlined_call_operand.vmem [shape: f32[8,256], index: 2, kind: output, shape index: {}]  }
   0x1   :  { %s15_s10 = sshll.u32 %s260_s9, 4  ;;  %s236_s13 = scalar_lea.hbm %s303_s1, 8192  ;;  %s16_s10 = int_to_ptr.vmem [resolvable:$true] %s15_s10 }
   0x2   :  { %p237_p0 = scmp.ne.s32.totalorder %s303_s1, %s236_s13  ;;  %p240_p1 = scmp.lt.u32.totalorder %s236_s13, %s303_s1 }
   0x4   :  { %p242_p2 = pnand %p240_p1, %p237_p0 }
   0x6   :  { %245 = shalt.err (!%p242_p2)
}
   0x7   :  { %s246_s18 = scalar_lea.vmem %s16_s10, 8192  ;;  %p251_p4 = scmp.lt.s32.totalorder %s16_s10, %s16_s10 }
   0x8   :  { %p247_p3 = scmp.ne.s32.totalorder %s16_s10, %s246_s18  ;;  %p252_p5 = scmp.lt.s32.totalorder %s246_s18, %s246_s18 }
   0xa   :  { %p253_p6 = por %p252_p5, %p251_p4 }
   0xc   :  { %p254_p7 = pnand %p253_p6, %p247_p3 }
   0xe   :  { %257 = shalt.err (!%p254_p7)
}
   0xf   :  { %s261_s19 = smov 256   ;;  %s262_s20 = smov 16  }
  0x10   :  { %21 = dma.hbm_to_vmem [thread:$0]  %s303_s1, 8192, %s16_s10, [#allocation3], %s261_s19, %s261_s19, %s262_s20  }
  0x11   :  { %258 = dma.done.wait [#allocation3], 8192  }
  0x12   :  { %259 = vsyncadd [#allocation3], 4294959104  ;;  %v28_v0 = vld [vmem:[#allocation2 + $0x8] sm:$0xff]  ;;  %v30_v1 = vld [vmem:[#allocation2 + $0x18] sm:$0xff] }
  0x13   :  { %v27_v2 = vld [vmem:[#allocation2] sm:$0xff]  ;;  %v169_v3 = vpack.c.bf16 %v30_v1, %v28_v0  ;;  %v29_v4 = vld [vmem:[#allocation2 + $0x10] sm:$0xff]  ;;  %v32_v5 = vld [vmem:[#allocation2 + $0x28] sm:$0xff] }
  0x14   :  { %v34_v6 = vld [vmem:[#allocation2 + $0x38] sm:$0xff]  ;;  %v171_v7 = vpack.c.bf16 %v29_v4, %v27_v2  ;;  %v31_v9 = vld [vmem:[#allocation2 + $0x20] sm:$0xff]  ;;  %v33_v10 = vld [vmem:[#allocation2 + $0x30] sm:$0xff] }
  0x15   :  { %v173_v8 = vpack.c.bf16 %v34_v6, %v32_v5  ;;  %v36_v11 = vld [vmem:[#allocation2 + $0x48] sm:$0xff]  ;;  %170 = vmatprep.subr.bf16.mxu0 %v169_v3  ;;  %v38_v12 = vld [vmem:[#allocation2 + $0x58] sm:$0xff]  ;;  %v175_v13 = vpack.c.bf16 %v33_v10, %v31_v9  ;;  %v35_v15 = vld [vmem:[#allocation2 + $0x40] sm:$0xff] }
  0x16   :  { %172 = vmatpush1.bf16.msra.mxu0 %v171_v7  ;;  %v177_v14 = vpack.c.bf16 %v38_v12, %v36_v11  ;;  %v37_v16 = vld [vmem:[#allocation2 + $0x50] sm:$0xff]  ;;  %v40_v17 = vld [vmem:[#allocation2 + $0x68] sm:$0xff]  ;;  %v42_v18 = vld [vmem:[#allocation2 + $0x78] sm:$0xff] }
  0x17   :  { %174 = vmatprep.subr.bf16.mxu0 %v173_v8  ;;  %v179_v19 = vpack.c.bf16 %v37_v16, %v35_v15  ;;  %v181_v20 = vpack.c.bf16 %v42_v18, %v40_v17  ;;  %v39_v21 = vld [vmem:[#allocation2 + $0x60] sm:$0xff]  ;;  %v41_v22 = vld [vmem:[#allocation2 + $0x70] sm:$0xff]  ;;  %v44_v23 = vld [vmem:[#allocation2 + $0x88] sm:$0xff] }
  0x18   :  { %v46_v24 = vld [vmem:[#allocation2 + $0x98] sm:$0xff]  ;;  %v183_v25 = vpack.c.bf16 %v41_v22, %v39_v21  ;;  %v43_v27 = vld [vmem:[#allocation2 + $0x80] sm:$0xff]  ;;  %v45_v28 = vld [vmem:[#allocation2 + $0x90] sm:$0xff] }
  0x19   :  { %v185_v26 = vpack.c.bf16 %v46_v24, %v44_v23  ;;  %v48_v29 = vld [vmem:[#allocation2 + $0xa8] sm:$0xff]  ;;  %v50_v30 = vld [vmem:[#allocation2 + $0xb8] sm:$0xff]  ;;  %v187_v31 = vpack.c.bf16 %v45_v28, %v43_v27  ;;  %v47_v33 = vld [vmem:[#allocation2 + $0xa0] sm:$0xff] }
  0x1a   :  { %176 = vmatpush1.bf16.msra.mxu0 %v175_v13  ;;  %v189_v32 = vpack.c.bf16 %v50_v30, %v48_v29  ;;  %v49_v34 = vld [vmem:[#allocation2 + $0xb0] sm:$0xff]  ;;  %v52_v35 = vld [vmem:[#allocation2 + $0xc8] sm:$0xff]  ;;  %v54_v36 = vld [vmem:[#allocation2 + $0xd8] sm:$0xff] }
  0x1b   :  { %178 = vmatprep.subr.bf16.mxu0 %v177_v14  ;;  %v191_v37 = vpack.c.bf16 %v49_v34, %v47_v33  ;;  %v193_v38 = vpack.c.bf16 %v54_v36, %v52_v35  ;;  %v51_v39 = vld [vmem:[#allocation2 + $0xc0] sm:$0xff]  ;;  %v53_v40 = vld [vmem:[#allocation2 + $0xd0] sm:$0xff]  ;;  %v26_v41 = vld [vmem:[%s302_s0 + $0x8] sm:$0xff] }
  0x1c   :  { %v56_v42 = vld [vmem:[#allocation2 + $0xe8] sm:$0xff]  ;;  %v58_v43 = vld [vmem:[#allocation2 + $0xf8] sm:$0xff]  ;;  %155 = vmatprep.mubr.f32.mxu0 %v26_v41  ;;  %v195_v44 = vpack.c.bf16 %v53_v40, %v51_v39  ;;  %v55_v46 = vld [vmem:[#allocation2 + $0xe0] sm:$0xff] }
  0x1d   :  { %v197_v45 = vpack.c.bf16 %v58_v43, %v56_v42  ;;  %v57_v47 = vld [vmem:[#allocation2 + $0xf0] sm:$0xff]  ;;  %v60_v48 = vld [vmem:[#allocation2 + $0x108] sm:$0xff]  ;;  %v62_v49 = vld [vmem:[#allocation2 + $0x118] sm:$0xff] }
  0x1e   :  { %180 = vmatpush1.bf16.msra.mxu0 %v179_v19  ;;  %v199_v50 = vpack.c.bf16 %v57_v47, %v55_v46  ;;  %v201_v51 = vpack.c.bf16 %v62_v49, %v60_v48  ;;  %v59_v52 = vld [vmem:[#allocation2 + $0x100] sm:$0xff]  ;;  %v61_v53 = vld [vmem:[#allocation2 + $0x110] sm:$0xff]  ;;  %v64_v54 = vld [vmem:[#allocation2 + $0x128] sm:$0xff] }
  0x1f   :  { %182 = vmatprep.subr.bf16.mxu0 %v181_v20  ;;  %v66_v55 = vld [vmem:[#allocation2 + $0x138] sm:$0xff]  ;;  %v203_v56 = vpack.c.bf16 %v61_v53, %v59_v52  ;;  %v63_v58 = vld [vmem:[#allocation2 + $0x120] sm:$0xff]  ;;  %v65_v59 = vld [vmem:[#allocation2 + $0x130] sm:$0xff] }
  0x20   :  { %v205_v57 = vpack.c.bf16 %v66_v55, %v64_v54  ;;  %v68_v60 = vld [vmem:[#allocation2 + $0x148] sm:$0xff]  ;;  %v70_v61 = vld [vmem:[#allocation2 + $0x158] sm:$0xff]  ;;  %v207_v62 = vpack.c.bf16 %v65_v59, %v63_v58  ;;  %v67_v0 = vld [vmem:[#allocation2 + $0x140] sm:$0xff] }
  0x21   :  { %v209_v63 = vpack.c.bf16 %v70_v61, %v68_v60  ;;  %v69_v1 = vld [vmem:[#allocation2 + $0x150] sm:$0xff]  ;;  %v72_v2 = vld [vmem:[#allocation2 + $0x168] sm:$0xff]  ;;  %v74_v3 = vld [vmem:[#allocation2 + $0x178] sm:$0xff] }
  0x22   :  { %184 = vmatpush1.bf16.msra.mxu0 %v183_v25  ;;  %v211_v4 = vpack.c.bf16 %v69_v1, %v67_v0  ;;  %v213_v5 = vpack.c.bf16 %v74_v3, %v72_v2  ;;  %v71_v6 = vld [vmem:[#allocation2 + $0x160] sm:$0xff]  ;;  %v73_v7 = vld [vmem:[#allocation2 + $0x170] sm:$0xff]  ;;  %v76_v8 = vld [vmem:[#allocation2 + $0x188] sm:$0xff] }
  0x23   :  { %186 = vmatprep.subr.bf16.mxu0 %v185_v26  ;;  %v78_v9 = vld [vmem:[#allocation2 + $0x198] sm:$0xff]  ;;  %v215_v10 = vpack.c.bf16 %v73_v7, %v71_v6  ;;  %v75_v12 = vld [vmem:[#allocation2 + $0x180] sm:$0xff]  ;;  %v77_v13 = vld [vmem:[#allocation2 + $0x190] sm:$0xff] }
  0x24   :  { %v217_v11 = vpack.c.bf16 %v78_v9, %v76_v8  ;;  %v80_v14 = vld [vmem:[#allocation2 + $0x1a8] sm:$0xff]  ;;  %v82_v15 = vld [vmem:[#allocation2 + $0x1b8] sm:$0xff]  ;;  %v219_v16 = vpack.c.bf16 %v77_v13, %v75_v12  ;;  %v79_v18 = vld [vmem:[#allocation2 + $0x1a0] sm:$0xff] }
  0x25   :  { %v221_v17 = vpack.c.bf16 %v82_v15, %v80_v14  ;;  %v81_v19 = vld [vmem:[#allocation2 + $0x1b0] sm:$0xff]  ;;  %v84_v20 = vld [vmem:[#allocation2 + $0x1c8] sm:$0xff]  ;;  %v86_v21 = vld [vmem:[#allocation2 + $0x1d8] sm:$0xff] }
  0x26   :  { %188 = vmatpush1.bf16.msra.mxu0 %v187_v31  ;;  %v223_v22 = vpack.c.bf16 %v81_v19, %v79_v18  ;;  %v225_v23 = vpack.c.bf16 %v86_v21, %v84_v20  ;;  %v83_v24 = vld [vmem:[#allocation2 + $0x1c0] sm:$0xff]  ;;  %v85_v25 = vld [vmem:[#allocation2 + $0x1d0] sm:$0xff]  ;;  %v88_v26 = vld [vmem:[#allocation2 + $0x1e8] sm:$0xff] }
  0x27   :  { %190 = vmatprep.subr.bf16.mxu0 %v189_v32  ;;  %v90_v27 = vld [vmem:[#allocation2 + $0x1f8] sm:$0xff]  ;;  %v227_v28 = vpack.c.bf16 %v85_v25, %v83_v24  ;;  %v87_v30 = vld [vmem:[#allocation2 + $0x1e0] sm:$0xff]  ;;  %v89_v31 = vld [vmem:[#allocation2 + $0x1f0] sm:$0xff] }
  0x28   :  { %v229_v29 = vpack.c.bf16 %v90_v27, %v88_v26  ;;  %v231_v32 = vpack.c.bf16 %v89_v31, %v87_v30  ;;  %v25_v33 = vld [vmem:[%s302_s0] sm:$0xff] }
  0x2a   :  { %192 = vmatpush1.bf16.msra.mxu0 %v191_v37 }
  0x2b   :  { %194 = vmatprep.subr.bf16.mxu0 %v193_v38 }
  0x2e   :  { %196 = vmatpush1.bf16.msra.mxu0 %v195_v44 }
  0x2f   :  { %198 = vmatprep.subr.bf16.mxu0 %v197_v45 }
  0x32   :  { %200 = vmatpush1.bf16.msra.mxu0 %v199_v50 }
  0x33   :  { %202 = vmatprep.subr.bf16.mxu0 %v201_v51 }
  0x36   :  { %204 = vmatpush1.bf16.msra.mxu0 %v203_v56 }
  0x37   :  { %206 = vmatprep.subr.bf16.mxu0 %v205_v57 }
  0x3a   :  { %208 = vmatpush1.bf16.msra.mxu0 %v207_v62 }
  0x3b   :  { %210 = vmatprep.subr.bf16.mxu0 %v209_v63 }
  0x3e   :  { %212 = vmatpush1.bf16.msra.mxu0 %v211_v4 }
  0x3f   :  { %214 = vmatprep.subr.bf16.mxu0 %v213_v5 }
  0x42   :  { %216 = vmatpush1.bf16.msra.mxu0 %v215_v10 }
  0x43   :  { %218 = vmatprep.subr.bf16.mxu0 %v217_v11 }
  0x46   :  { %220 = vmatpush1.bf16.msra.mxu0 %v219_v16 }
  0x47   :  { %222 = vmatprep.subr.bf16.mxu0 %v221_v17 }
  0x4a   :  { %224 = vmatpush1.bf16.msra.mxu0 %v223_v22 }
  0x4b   :  { %226 = vmatprep.subr.bf16.mxu0 %v225_v23 }
  0x4e   :  { %228 = vmatpush1.bf16.msra.mxu0 %v227_v28 }
  0x4f   :  { %230 = vmatprep.subr.bf16.mxu0 %v229_v29 }
  0x52   :  { %232 = vmatpush1.bf16.msra.mxu0 %v231_v32 }
  0x55   :  { %156 = vmatmul.mubr.f32.vlgmr.msra.gmra.mrb[0].mxu0 %v25_v33 }
 0x128   :  { %v157_v34 = vpop.f32.mrb[0].mxu0 }
 0x129   :  { %162 = vst [vmem:[%s304_s2] sm:$0xff] %v157_v34  ;;  %v159_v35 = vpop.f32.mrb[1].mxu0 }
 0x12a   :  { %163 = vst [vmem:[%s304_s2 + $0x8] sm:$0xff] %v159_v35 }
 0x12b   :  { %168 = vsyncpa [#allocation3], 1 }

</bundles_post_ra>
